<compile_context>
chip_gen: v7x
topology: tpu7x:2x2x1
jax: 0.10.0
libtpu: 0.0.40
codegen_flags: <defaults>
</compile_context>

<pallas_src>
import functools

import jax
import jax.numpy as jnp
from jax import lax
from jax.experimental import pallas as pl
from jax.experimental.pallas import tpu as pltpu


# ----------------------------- Pallas kernel --------------------------------


def _gru_bidir_kernel(
    gx_f_ref, gx_b_ref,          # (TT, B, 3H) f32 precomputed input projections (+ folded biases)
    whh_f_ref, whh_b_ref,        # (H, 3H) bf16 recurrent weights
    bhn_f_ref, bhn_b_ref,        # (1, H) f32 hidden bias for the n-gate (cannot be folded into gx)
    out_f_ref, out_b_ref,        # (TT, B, H) f32
    h_f, h_b,                    # (B, H) f32 scratch, persists across grid steps
):
    i = pl.program_id(0)

    @pl.when(i == 0)
    def _():
        h_f[...] = jnp.zeros_like(h_f)
        h_b[...] = jnp.zeros_like(h_b)

    TT, B, H3 = gx_f_ref.shape
    H = H3 // 3

    # Hoist weight loads and bias broadcasts out of the unrolled time loop.
    whh_f = whh_f_ref[...]
    whh_b = whh_b_ref[...]
    bhn_f = jnp.broadcast_to(bhn_f_ref[...], (B, H))
    bhn_b = jnp.broadcast_to(bhn_b_ref[...], (B, H))

    def gru_cell(gx, h, whh, bhn):
        # Only the recurrent projection stays on the serialized critical path.
        gh = jnp.dot(h.astype(whh.dtype), whh, preferred_element_type=jnp.float32)
        # PyTorch GRU gate order: r, z, n.  b_ih (all) and b_hh (r,z) are already in gx.
        r = jax.nn.sigmoid(gx[:, :H] + gh[:, :H])
        z = jax.nn.sigmoid(gx[:, H:2 * H] + gh[:, H:2 * H])
        n = jnp.tanh(gx[:, 2 * H:] + r * (gh[:, 2 * H:] + bhn))
        return (1.0 - z) * n + z * h

    def body(k, carry):
        # Forward direction walks the time block top-down.
        hf_new = gru_cell(gx_f_ref[k], h_f[...], whh_f, bhn_f)
        h_f[...] = hf_new
        out_f_ref[k] = hf_new.astype(out_f_ref.dtype)
        # Reverse direction walks its (reverse-mapped) block bottom-up.
        kb = TT - 1 - k
        hb_new = gru_cell(gx_b_ref[kb], h_b[...], whh_b, bhn_b)
        h_b[...] = hb_new
        out_b_ref[kb] = hb_new.astype(out_b_ref.dtype)
        return carry

    lax.fori_loop(0, TT, body, 0, unroll=True)


def bidir_gru_pallas(embedded, params, block_t=4):
    """embedded: (T, B, E) f32. Returns (T, B, 2*H) f32."""
    T, B, E = embedded.shape
    H = params["whh_f"].shape[0]

    # Time-block size TT (timesteps per grid step); must divide T.
    tt = min(block_t, T)
    while T % tt:
        tt -= 1
    n_t = T // tt

    # ---- hoisted input projection: one big MXU matmul for both directions ----
    # gx columns [0:3H] = forward, [3H:6H] = backward; biases folded in:
    #   r,z gates get b_ih + b_hh, n gate gets only b_ih (b_hh_n stays inside r*(.)).
    def folded_bias(bih, bhh):
        return jnp.concatenate([bih[:, :2 * H] + bhh[:, :2 * H], bih[:, 2 * H:]], axis=1)

    wih_cat = jnp.concatenate([params["wih_f"], params["wih_b"]], axis=1)       # (E, 6H)
    bias_cat = jnp.concatenate(
        [folded_bias(params["bih_f"], params["bhh_f"]),
         folded_bias(params["bih_b"], params["bhh_b"])], axis=1)                # (1, 6H)

    gx = jnp.dot(embedded.reshape(T * B, E).astype(jnp.bfloat16),
                 wih_cat.astype(jnp.bfloat16),
                 preferred_element_type=jnp.float32) + bias_cat
    gx = gx.reshape(T, B, 2, 3 * H)
    gx_f = gx[:, :, 0, :]                                                       # (T, B, 3H)
    gx_b = gx[:, :, 1, :]                                                       # (T, B, 3H)

    whh_f = params["whh_f"].astype(jnp.bfloat16)
    whh_b = params["whh_b"].astype(jnp.bfloat16)
    bhn_f = params["bhh_f"][:, 2 * H:]
    bhn_b = params["bhh_b"][:, 2 * H:]

    full = lambda shape: pl.BlockSpec(shape, lambda i: (0,) * len(shape))

    out_f, out_b = pl.pallas_call(
        _gru_bidir_kernel,
        out_shape=(
            jax.ShapeDtypeStruct((T, B, H), jnp.float32),
            jax.ShapeDtypeStruct((T, B, H), jnp.float32),
        ),
        grid_spec=pltpu.PrefetchScalarGridSpec(
            num_scalar_prefetch=0,
            grid=(n_t,),
            in_specs=[
                pl.BlockSpec((tt, B, 3 * H), lambda i: (i, 0, 0)),              # gx fwd
                pl.BlockSpec((tt, B, 3 * H), lambda i: (n_t - 1 - i, 0, 0)),    # gx bwd
                full((H, 3 * H)),   # W_hh fwd (bf16, constant block index)
                full((H, 3 * H)),   # W_hh bwd (bf16)
                full((1, H)),       # b_hh n-gate fwd
                full((1, H)),       # b_hh n-gate bwd
            ],
            out_specs=[
                pl.BlockSpec((tt, B, H), lambda i: (i, 0, 0)),
                pl.BlockSpec((tt, B, H), lambda i: (n_t - 1 - i, 0, 0)),
            ],
            scratch_shapes=[
                pltpu.VMEM((B, H), jnp.float32),   # hidden state fwd
                pltpu.VMEM((B, H), jnp.float32),   # hidden state bwd
            ],
        ),
        compiler_params=pltpu.CompilerParams(
            dimension_semantics=("arbitrary",),   # time recurrence is sequential
        ),
    )(gx_f, gx_b, whh_f, whh_b, bhn_f, bhn_b)

    # TODO(synk): the concat is an extra HBM pass; at large H emit a fused layout or
    # fold into the consumer instead.
    return jnp.concatenate([out_f, out_b], axis=-1)


# ------------------------------ Encoder glue ---------------------------------


def init_encoder_params(key, input_dim, emb_dim, enc_hid_dim):
    """Deterministic init mirroring nn.Embedding / nn.GRU parameter shapes."""
    H = enc_hid_dim
    k = 1.0 / jnp.sqrt(H)
    keys = jax.random.split(key, 9)
    u = lambda kk, shape: jax.random.uniform(kk, shape, jnp.float32, -k, k)
    return {
        # nn.Embedding(input_dim, emb_dim): N(0,1) init
        "embedding": jax.random.normal(keys[0], (input_dim, emb_dim), jnp.float32),
        # GRU weights stored pre-transposed: (in, 3H) so the kernel does x @ W; gate order r,z,n.
        "wih_f": u(keys[1], (emb_dim, 3 * H)),
        "whh_f": u(keys[2], (H, 3 * H)),
        "bih_f": u(keys[3], (1, 3 * H)),
        "bhh_f": u(keys[4], (1, 3 * H)),
        "wih_b": u(keys[5], (emb_dim, 3 * H)),
        "whh_b": u(keys[6], (H, 3 * H)),
        "bih_b": u(keys[7], (1, 3 * H)),
        "bhh_b": u(keys[8], (1, 3 * H)),
    }


def encoder_forward(params, src):
    """src: (T, B) int32 tokens -> outputs (T, B, 2*H)."""
    embedded = jnp.take(params["embedding"], src, axis=0)  # (T, B, E), plain-JAX gather glue
    # TODO(synk): nn.Dropout treated as identity (eval / inference mode).
    return bidir_gru_pallas(embedded, params)


# --------------------------- pure-JAX reference (f32) -------------------------


def _gru_scan_ref(x_seq, wih, whh, bih, bhh):
    H = whh.shape[0]

    def step(h, x):
        gx = x @ wih + bih
        gh = h @ whh + bhh
        r = jax.nn.sigmoid(gx[:, :H] + gh[:, :H])
        z = jax.nn.sigmoid(gx[:, H:2 * H] + gh[:, H:2 * H])
        n = jnp.tanh(gx[:, 2 * H:] + r * gh[:, 2 * H:])
        h_new = (1.0 - z) * n + z * h
        return h_new, h_new

    B = x_seq.shape[1]
    h0 = jnp.zeros((B, H), jnp.float32)
    _, ys = jax.lax.scan(step, h0, x_seq)
    return ys


def encoder_forward_ref(params, src):
    embedded = jnp.take(params["embedding"], src, axis=0)
    out_f = _gru_scan_ref(embedded, params["wih_f"], params["whh_f"],
                          params["bih_f"], params["bhh_f"])
    out_b = _gru_scan_ref(embedded[::-1], params["wih_b"], params["whh_b"],
                          params["bih_b"], params["bhh_b"])[::-1]
    return jnp.concatenate([out_f, out_b], axis=-1)


# ----------------------------------- main -------------------------------------


if __name__ == "__main__":
    input_dim = 32    # vocab size
    emb_dim = 16
    enc_hid_dim = 32
    seq_len = 8
    batch = 8         # multiple of 8 -> sublane-full f32 tiles

    key = jax.random.PRNGKey(0)
    pkey, skey = jax.random.split(key)
    params = init_encoder_params(pkey, input_dim, emb_dim, enc_hid_dim)
    src = jax.random.randint(skey, (seq_len, batch), 0, input_dim, dtype=jnp.int32)

    out = jax.jit(functools.partial(encoder_forward, params))(src)
    out = jax.block_until_ready(out)

    ref = encoder_forward_ref(params, src)
    assert out.shape == (seq_len, batch, 2 * enc_hid_dim), out.shape
    # bf16 MXU matmuls in the kernel vs. full-f32 reference -> loose tolerance.
    max_err = float(jnp.max(jnp.abs(out - ref)))
    assert jnp.allclose(out, ref, atol=5e-2, rtol=1e-2), max_err

    print("KERNEL_OK")
</pallas_src>

<mosaic_0001>
module attributes {stable_mosaic.version = 11 : i64} {
  func.func @_gru_bidir_kernel(%arg0: i32, %arg1: memref<4x8x96xf32, #tpu.memory_space<vmem>>, %arg2: memref<4x8x96xf32, #tpu.memory_space<vmem>>, %arg3: memref<32x96xbf16, #tpu.memory_space<vmem>>, %arg4: memref<32x96xbf16, #tpu.memory_space<vmem>>, %arg5: memref<1x32xf32, #tpu.memory_space<vmem>>, %arg6: memref<1x32xf32, #tpu.memory_space<vmem>>, %arg7: memref<4x8x32xf32, #tpu.memory_space<vmem>>, %arg8: memref<4x8x32xf32, #tpu.memory_space<vmem>>, %arg9: memref<8x32xf32, #tpu.memory_space<vmem>>, %arg10: memref<8x32xf32, #tpu.memory_space<vmem>>) attributes {dimension_semantics = [#tpu.dimension_semantics<arbitrary>], iteration_bounds = array<i64: 2>, scalar_prefetch = 0 : i64, scratch_operands = 2 : i64, tpu.core_type = #tpu.core_type<tc>, window_params = [{transform_indices = @transform_0, window_bounds = array<i64: 4, 8, 96>}, {transform_indices = @transform_1, window_bounds = array<i64: 4, 8, 96>}, {pipeline_mode = #tpu.pipeline_mode<synchronous>, transform_indices = @transform_2, window_bounds = array<i64: 32, 96>}, {pipeline_mode = #tpu.pipeline_mode<synchronous>, transform_indices = @transform_3, window_bounds = array<i64: 32, 96>}, {pipeline_mode = #tpu.pipeline_mode<synchronous>, transform_indices = @transform_4, window_bounds = array<i64: 1, 32>}, {pipeline_mode = #tpu.pipeline_mode<synchronous>, transform_indices = @transform_5, window_bounds = array<i64: 1, 32>}, {transform_indices = @transform_6, window_bounds = array<i64: 4, 8, 32>}, {transform_indices = @transform_7, window_bounds = array<i64: 4, 8, 32>}]} {
    %c0_i32 = arith.constant 0 : i32
    %0 = arith.cmpi eq, %arg0, %c0_i32 : i32
    %1 = arith.extui %0 : i1 to i32
    %c0_i32_0 = arith.constant 0 : i32
    %2 = arith.cmpi ne, %1, %c0_i32_0 : i32
    scf.if %2 {
      %cst_108 = arith.constant 0.000000e+00 : f32
      %319 = vector.broadcast %cst_108 : f32 to vector<8x32xf32>
      %c0_109 = arith.constant 0 : index
      %c0_110 = arith.constant 0 : index
      %320 = vector.load %arg9[%c0_109, %c0_110] : memref<8x32xf32, #tpu.memory_space<vmem>>, vector<8x32xf32>
      tpu.vector_store %arg9[%c0_109, %c0_110], %319 {strides = array<i32>} : memref<8x32xf32, #tpu.memory_space<vmem>>, vector<8x32xf32>,
      %cst_111 = arith.constant 0.000000e+00 : f32
      %321 = vector.broadcast %cst_111 : f32 to vector<8x32xf32>
      %c0_112 = arith.constant 0 : index
      %c0_113 = arith.constant 0 : index
      %322 = vector.load %arg10[%c0_112, %c0_113] : memref<8x32xf32, #tpu.memory_space<vmem>>, vector<8x32xf32>
      tpu.vector_store %arg10[%c0_112, %c0_113], %321 {strides = array<i32>} : memref<8x32xf32, #tpu.memory_space<vmem>>, vector<8x32xf32>,
    } else {
    }
    %c0 = arith.constant 0 : index
    %c0_1 = arith.constant 0 : index
    %3 = vector.load %arg3[%c0, %c0_1] : memref<32x96xbf16, #tpu.memory_space<vmem>>, vector<32x96xbf16>
    %c0_2 = arith.constant 0 : index
    %c0_3 = arith.constant 0 : index
    %4 = vector.load %arg4[%c0_2, %c0_3] : memref<32x96xbf16, #tpu.memory_space<vmem>>, vector<32x96xbf16>
    %c0_4 = arith.constant 0 : index
    %c0_5 = arith.constant 0 : index
    %5 = vector.load %arg5[%c0_4, %c0_5] : memref<1x32xf32, #tpu.memory_space<vmem>>, vector<1x32xf32>
    %6 = vector.shape_cast %5 : vector<1x32xf32> to vector<1x32xf32>
    %7 = vector.broadcast %6 : vector<1x32xf32> to vector<8x32xf32>
    %c0_6 = arith.constant 0 : index
    %c0_7 = arith.constant 0 : index
    %8 = vector.load %arg6[%c0_6, %c0_7] : memref<1x32xf32, #tpu.memory_space<vmem>>, vector<1x32xf32>
    %9 = vector.shape_cast %8 : vector<1x32xf32> to vector<1x32xf32>
    %10 = vector.broadcast %9 : vector<1x32xf32> to vector<8x32xf32>
    %c0_i32_8 = arith.constant 0 : i32
    %11 = arith.index_cast %c0_i32_8 : i32 to index
    %c0_9 = arith.constant 0 : index
    %c0_10 = arith.constant 0 : index
    %12 = vector.load %arg1[%11, %c0_9, %c0_10] : memref<4x8x96xf32, #tpu.memory_space<vmem>>, vector<1x8x96xf32>
    %13 = vector.shape_cast %12 : vector<1x8x96xf32> to vector<8x96xf32>
    %c0_11 = arith.constant 0 : index
    %c0_12 = arith.constant 0 : index
    %14 = vector.load %arg9[%c0_11, %c0_12] : memref<8x32xf32, #tpu.memory_space<vmem>>, vector<8x32xf32>
    %15 = arith.truncf %14 : vector<8x32xf32> to vector<8x32xbf16>
    %cst = arith.constant dense<0.000000e+00> : vector<8x96xf32>
    %16 = tpu.matmul %15, %3, %cst {dimension_numbers = #tpu.dot_dimension_numbers<[1], [0], [0], [1], [0, 0, 1, 1], [], []>} : vector<8x32xbf16>, vector<32x96xbf16>, vector<8x96xf32> -> vector<8x96xf32>
    %17 = vector.extract_strided_slice %13 {offsets = [0, 0], sizes = [8, 32], strides = [1, 1]} : vector<8x96xf32> to vector<8x32xf32>
    %18 = vector.extract_strided_slice %16 {offsets = [0, 0], sizes = [8, 32], strides = [1, 1]} : vector<8x96xf32> to vector<8x32xf32>
    %19 = arith.addf %17, %18 : vector<8x32xf32>
    %20 = arith.negf %19 : vector<8x32xf32>
    %21 = math.exp %20 : vector<8x32xf32>
    %cst_13 = arith.constant 1.000000e+00 : f32
    %22 = vector.broadcast %cst_13 : f32 to vector<8x32xf32>
    %23 = arith.addf %22, %21 : vector<8x32xf32>
    %24 = arith.divf %22, %23 : vector<8x32xf32>
    %25 = vector.extract_strided_slice %13 {offsets = [0, 32], sizes = [8, 32], strides = [1, 1]} : vector<8x96xf32> to vector<8x32xf32>
    %26 = vector.extract_strided_slice %16 {offsets = [0, 32], sizes = [8, 32], strides = [1, 1]} : vector<8x96xf32> to vector<8x32xf32>
    %27 = arith.addf %25, %26 : vector<8x32xf32>
    %28 = arith.negf %27 : vector<8x32xf32>
    %29 = math.exp %28 : vector<8x32xf32>
    %cst_14 = arith.constant 1.000000e+00 : f32
    %30 = vector.broadcast %cst_14 : f32 to vector<8x32xf32>
    %31 = arith.addf %30, %29 : vector<8x32xf32>
    %32 = arith.divf %30, %31 : vector<8x32xf32>
    %33 = vector.extract_strided_slice %13 {offsets = [0, 64], sizes = [8, 32], strides = [1, 1]} : vector<8x96xf32> to vector<8x32xf32>
    %34 = vector.extract_strided_slice %16 {offsets = [0, 64], sizes = [8, 32], strides = [1, 1]} : vector<8x96xf32> to vector<8x32xf32>
    %35 = arith.addf %34, %7 : vector<8x32xf32>
    %36 = arith.mulf %24, %35 : vector<8x32xf32>
    %37 = arith.addf %33, %36 : vector<8x32xf32>
    %38 = math.tanh %37 : vector<8x32xf32>
    %cst_15 = arith.constant 1.000000e+00 : f32
    %39 = vector.broadcast %cst_15 : f32 to vector<8x32xf32>
    %40 = arith.subf %39, %32 : vector<8x32xf32>
    %41 = arith.mulf %40, %38 : vector<8x32xf32>
    %42 = arith.mulf %32, %14 : vector<8x32xf32>
    %43 = arith.addf %41, %42 : vector<8x32xf32>
    %c0_16 = arith.constant 0 : index
    %c0_17 = arith.constant 0 : index
    %44 = vector.load %arg9[%c0_16, %c0_17] : memref<8x32xf32, #tpu.memory_space<vmem>>, vector<8x32xf32>
    tpu.vector_store %arg9[%c0_16, %c0_17], %43 {strides = array<i32>} : memref<8x32xf32, #tpu.memory_space<vmem>>, vector<8x32xf32>,
    %45 = arith.index_cast %c0_i32_8 : i32 to index
    %c0_18 = arith.constant 0 : index
    %c0_19 = arith.constant 0 : index
    %46 = vector.load %arg7[%45, %c0_18, %c0_19] : memref<4x8x32xf32, #tpu.memory_space<vmem>>, vector<1x8x32xf32>
    %47 = vector.shape_cast %46 : vector<1x8x32xf32> to vector<8x32xf32>
    %48 = vector.shape_cast %43 : vector<8x32xf32> to vector<1x8x32xf32>
    tpu.vector_store %arg7[%45, %c0_18, %c0_19], %48 {strides = array<i32>} : memref<4x8x32xf32, #tpu.memory_space<vmem>>, vector<1x8x32xf32>,
    %c3_i32 = arith.constant 3 : i32
    %49 = arith.subi %c3_i32, %c0_i32_8 : i32
    %50 = arith.index_cast %49 : i32 to index
    %c0_20 = arith.constant 0 : index
    %c0_21 = arith.constant 0 : index
    %51 = vector.load %arg2[%50, %c0_20, %c0_21] : memref<4x8x96xf32, #tpu.memory_space<vmem>>, vector<1x8x96xf32>
    %52 = vector.shape_cast %51 : vector<1x8x96xf32> to vector<8x96xf32>
    %c0_22 = arith.constant 0 : index
    %c0_23 = arith.constant 0 : index
    %53 = vector.load %arg10[%c0_22, %c0_23] : memref<8x32xf32, #tpu.memory_space<vmem>>, vector<8x32xf32>
    %54 = arith.truncf %53 : vector<8x32xf32> to vector<8x32xbf16>
    %cst_24 = arith.constant dense<0.000000e+00> : vector<8x96xf32>
    %55 = tpu.matmul %54, %4, %cst_24 {dimension_numbers = #tpu.dot_dimension_numbers<[1], [0], [0], [1], [0, 0, 1, 1], [], []>} : vector<8x32xbf16>, vector<32x96xbf16>, vector<8x96xf32> -> vector<8x96xf32>
    %56 = vector.extract_strided_slice %52 {offsets = [0, 0], sizes = [8, 32], strides = [1, 1]} : vector<8x96xf32> to vector<8x32xf32>
    %57 = vector.extract_strided_slice %55 {offsets = [0, 0], sizes = [8, 32], strides = [1, 1]} : vector<8x96xf32> to vector<8x32xf32>
    %58 = arith.addf %56, %57 : vector<8x32xf32>
    %59 = arith.negf %58 : vector<8x32xf32>
    %60 = math.exp %59 : vector<8x32xf32>
    %cst_25 = arith.constant 1.000000e+00 : f32
    %61 = vector.broadcast %cst_25 : f32 to vector<8x32xf32>
    %62 = arith.addf %61, %60 : vector<8x32xf32>
    %63 = arith.divf %61, %62 : vector<8x32xf32>
    %64 = vector.extract_strided_slice %52 {offsets = [0, 32], sizes = [8, 32], strides = [1, 1]} : vector<8x96xf32> to vector<8x32xf32>
    %65 = vector.extract_strided_slice %55 {offsets = [0, 32], sizes = [8, 32], strides = [1, 1]} : vector<8x96xf32> to vector<8x32xf32>
    %66 = arith.addf %64, %65 : vector<8x32xf32>
    %67 = arith.negf %66 : vector<8x32xf32>
    %68 = math.exp %67 : vector<8x32xf32>
    %cst_26 = arith.constant 1.000000e+00 : f32
    %69 = vector.broadcast %cst_26 : f32 to vector<8x32xf32>
    %70 = arith.addf %69, %68 : vector<8x32xf32>
    %71 = arith.divf %69, %70 : vector<8x32xf32>
    %72 = vector.extract_strided_slice %52 {offsets = [0, 64], sizes = [8, 32], strides = [1, 1]} : vector<8x96xf32> to vector<8x32xf32>
    %73 = vector.extract_strided_slice %55 {offsets = [0, 64], sizes = [8, 32], strides = [1, 1]} : vector<8x96xf32> to vector<8x32xf32>
    %74 = arith.addf %73, %10 : vector<8x32xf32>
    %75 = arith.mulf %63, %74 : vector<8x32xf32>
    %76 = arith.addf %72, %75 : vector<8x32xf32>
    %77 = math.tanh %76 : vector<8x32xf32>
    %cst_27 = arith.constant 1.000000e+00 : f32
    %78 = vector.broadcast %cst_27 : f32 to vector<8x32xf32>
    %79 = arith.subf %78, %71 : vector<8x32xf32>
    %80 = arith.mulf %79, %77 : vector<8x32xf32>
    %81 = arith.mulf %71, %53 : vector<8x32xf32>
    %82 = arith.addf %80, %81 : vector<8x32xf32>
    %c0_28 = arith.constant 0 : index
    %c0_29 = arith.constant 0 : index
    %83 = vector.load %arg10[%c0_28, %c0_29] : memref<8x32xf32, #tpu.memory_space<vmem>>, vector<8x32xf32>
    tpu.vector_store %arg10[%c0_28, %c0_29], %82 {strides = array<i32>} : memref<8x32xf32, #tpu.memory_space<vmem>>, vector<8x32xf32>,
    %84 = arith.index_cast %49 : i32 to index
    %c0_30 = arith.constant 0 : index
    %c0_31 = arith.constant 0 : index
    %85 = vector.load %arg8[%84, %c0_30, %c0_31] : memref<4x8x32xf32, #tpu.memory_space<vmem>>, vector<1x8x32xf32>
    %86 = vector.shape_cast %85 : vector<1x8x32xf32> to vector<8x32xf32>
    %87 = vector.shape_cast %82 : vector<8x32xf32> to vector<1x8x32xf32>
    tpu.vector_store %arg8[%84, %c0_30, %c0_31], %87 {strides = array<i32>} : memref<4x8x32xf32, #tpu.memory_space<vmem>>, vector<1x8x32xf32>,
    %c1_i32 = arith.constant 1 : i32
    %88 = arith.index_cast %c1_i32 : i32 to index
    %c0_32 = arith.constant 0 : index
    %c0_33 = arith.constant 0 : index
    %89 = vector.load %arg1[%88, %c0_32, %c0_33] : memref<4x8x96xf32, #tpu.memory_space<vmem>>, vector<1x8x96xf32>
    %90 = vector.shape_cast %89 : vector<1x8x96xf32> to vector<8x96xf32>
    %c0_34 = arith.constant 0 : index
    %c0_35 = arith.constant 0 : index
    %91 = vector.load %arg9[%c0_34, %c0_35] : memref<8x32xf32, #tpu.memory_space<vmem>>, vector<8x32xf32>
    %92 = arith.truncf %91 : vector<8x32xf32> to vector<8x32xbf16>
    %cst_36 = arith.constant dense<0.000000e+00> : vector<8x96xf32>
    %93 = tpu.matmul %92, %3, %cst_36 {dimension_numbers = #tpu.dot_dimension_numbers<[1], [0], [0], [1], [0, 0, 1, 1], [], []>} : vector<8x32xbf16>, vector<32x96xbf16>, vector<8x96xf32> -> vector<8x96xf32>
    %94 = vector.extract_strided_slice %90 {offsets = [0, 0], sizes = [8, 32], strides = [1, 1]} : vector<8x96xf32> to vector<8x32xf32>
    %95 = vector.extract_strided_slice %93 {offsets = [0, 0], sizes = [8, 32], strides = [1, 1]} : vector<8x96xf32> to vector<8x32xf32>
    %96 = arith.addf %94, %95 : vector<8x32xf32>
    %97 = arith.negf %96 : vector<8x32xf32>
    %98 = math.exp %97 : vector<8x32xf32>
    %cst_37 = arith.constant 1.000000e+00 : f32
    %99 = vector.broadcast %cst_37 : f32 to vector<8x32xf32>
    %100 = arith.addf %99, %98 : vector<8x32xf32>
    %101 = arith.divf %99, %100 : vector<8x32xf32>
    %102 = vector.extract_strided_slice %90 {offsets = [0, 32], sizes = [8, 32], strides = [1, 1]} : vector<8x96xf32> to vector<8x32xf32>
    %103 = vector.extract_strided_slice %93 {offsets = [0, 32], sizes = [8, 32], strides = [1, 1]} : vector<8x96xf32> to vector<8x32xf32>
    %104 = arith.addf %102, %103 : vector<8x32xf32>
    %105 = arith.negf %104 : vector<8x32xf32>
    %106 = math.exp %105 : vector<8x32xf32>
    %cst_38 = arith.constant 1.000000e+00 : f32
    %107 = vector.broadcast %cst_38 : f32 to vector<8x32xf32>
    %108 = arith.addf %107, %106 : vector<8x32xf32>
    %109 = arith.divf %107, %108 : vector<8x32xf32>
    %110 = vector.extract_strided_slice %90 {offsets = [0, 64], sizes = [8, 32], strides = [1, 1]} : vector<8x96xf32> to vector<8x32xf32>
    %111 = vector.extract_strided_slice %93 {offsets = [0, 64], sizes = [8, 32], strides = [1, 1]} : vector<8x96xf32> to vector<8x32xf32>
    %112 = arith.addf %111, %7 : vector<8x32xf32>
    %113 = arith.mulf %101, %112 : vector<8x32xf32>
    %114 = arith.addf %110, %113 : vector<8x32xf32>
    %115 = math.tanh %114 : vector<8x32xf32>
    %cst_39 = arith.constant 1.000000e+00 : f32
    %116 = vector.broadcast %cst_39 : f32 to vector<8x32xf32>
    %117 = arith.subf %116, %109 : vector<8x32xf32>
    %118 = arith.mulf %117, %115 : vector<8x32xf32>
    %119 = arith.mulf %109, %91 : vector<8x32xf32>
    %120 = arith.addf %118, %119 : vector<8x32xf32>
    %c0_40 = arith.constant 0 : index
    %c0_41 = arith.constant 0 : index
    %121 = vector.load %arg9[%c0_40, %c0_41] : memref<8x32xf32, #tpu.memory_space<vmem>>, vector<8x32xf32>
    tpu.vector_store %arg9[%c0_40, %c0_41], %120 {strides = array<i32>} : memref<8x32xf32, #tpu.memory_space<vmem>>, vector<8x32xf32>,
    %122 = arith.index_cast %c1_i32 : i32 to index
    %c0_42 = arith.constant 0 : index
    %c0_43 = arith.constant 0 : index
    %123 = vector.load %arg7[%122, %c0_42, %c0_43] : memref<4x8x32xf32, #tpu.memory_space<vmem>>, vector<1x8x32xf32>
    %124 = vector.shape_cast %123 : vector<1x8x32xf32> to vector<8x32xf32>
    %125 = vector.shape_cast %120 : vector<8x32xf32> to vector<1x8x32xf32>
    tpu.vector_store %arg7[%122, %c0_42, %c0_43], %125 {strides = array<i32>} : memref<4x8x32xf32, #tpu.memory_space<vmem>>, vector<1x8x32xf32>,
    %c3_i32_44 = arith.constant 3 : i32
    %126 = arith.subi %c3_i32_44, %c1_i32 : i32
    %127 = arith.index_cast %126 : i32 to index
    %c0_45 = arith.constant 0 : index
    %c0_46 = arith.constant 0 : index
    %128 = vector.load %arg2[%127, %c0_45, %c0_46] : memref<4x8x96xf32, #tpu.memory_space<vmem>>, vector<1x8x96xf32>
    %129 = vector.shape_cast %128 : vector<1x8x96xf32> to vector<8x96xf32>
    %c0_47 = arith.constant 0 : index
    %c0_48 = arith.constant 0 : index
    %130 = vector.load %arg10[%c0_47, %c0_48] : memref<8x32xf32, #tpu.memory_space<vmem>>, vector<8x32xf32>
    %131 = arith.truncf %130 : vector<8x32xf32> to vector<8x32xbf16>
    %cst_49 = arith.constant dense<0.000000e+00> : vector<8x96xf32>
    %132 = tpu.matmul %131, %4, %cst_49 {dimension_numbers = #tpu.dot_dimension_numbers<[1], [0], [0], [1], [0, 0, 1, 1], [], []>} : vector<8x32xbf16>, vector<32x96xbf16>, vector<8x96xf32> -> vector<8x96xf32>
    %133 = vector.extract_strided_slice %129 {offsets = [0, 0], sizes = [8, 32], strides = [1, 1]} : vector<8x96xf32> to vector<8x32xf32>
    %134 = vector.extract_strided_slice %132 {offsets = [0, 0], sizes = [8, 32], strides = [1, 1]} : vector<8x96xf32> to vector<8x32xf32>
    %135 = arith.addf %133, %134 : vector<8x32xf32>
    %136 = arith.negf %135 : vector<8x32xf32>
    %137 = math.exp %136 : vector<8x32xf32>
    %cst_50 = arith.constant 1.000000e+00 : f32
    %138 = vector.broadcast %cst_50 : f32 to vector<8x32xf32>
    %139 = arith.addf %138, %137 : vector<8x32xf32>
    %140 = arith.divf %138, %139 : vector<8x32xf32>
    %141 = vector.extract_strided_slice %129 {offsets = [0, 32], sizes = [8, 32], strides = [1, 1]} : vector<8x96xf32> to vector<8x32xf32>
    %142 = vector.extract_strided_slice %132 {offsets = [0, 32], sizes = [8, 32], strides = [1, 1]} : vector<8x96xf32> to vector<8x32xf32>
    %143 = arith.addf %141, %142 : vector<8x32xf32>
    %144 = arith.negf %143 : vector<8x32xf32>
    %145 = math.exp %144 : vector<8x32xf32>
    %cst_51 = arith.constant 1.000000e+00 : f32
    %146 = vector.broadcast %cst_51 : f32 to vector<8x32xf32>
    %147 = arith.addf %146, %145 : vector<8x32xf32>
    %148 = arith.divf %146, %147 : vector<8x32xf32>
    %149 = vector.extract_strided_slice %129 {offsets = [0, 64], sizes = [8, 32], strides = [1, 1]} : vector<8x96xf32> to vector<8x32xf32>
    %150 = vector.extract_strided_slice %132 {offsets = [0, 64], sizes = [8, 32], strides = [1, 1]} : vector<8x96xf32> to vector<8x32xf32>
    %151 = arith.addf %150, %10 : vector<8x32xf32>
    %152 = arith.mulf %140, %151 : vector<8x32xf32>
    %153 = arith.addf %149, %152 : vector<8x32xf32>
    %154 = math.tanh %153 : vector<8x32xf32>
    %cst_52 = arith.constant 1.000000e+00 : f32
    %155 = vector.broadcast %cst_52 : f32 to vector<8x32xf32>
    %156 = arith.subf %155, %148 : vector<8x32xf32>
    %157 = arith.mulf %156, %154 : vector<8x32xf32>
    %158 = arith.mulf %148, %130 : vector<8x32xf32>
    %159 = arith.addf %157, %158 : vector<8x32xf32>
    %c0_53 = arith.constant 0 : index
    %c0_54 = arith.constant 0 : index
    %160 = vector.load %arg10[%c0_53, %c0_54] : memref<8x32xf32, #tpu.memory_space<vmem>>, vector<8x32xf32>
    tpu.vector_store %arg10[%c0_53, %c0_54], %159 {strides = array<i32>} : memref<8x32xf32, #tpu.memory_space<vmem>>, vector<8x32xf32>,
    %161 = arith.index_cast %126 : i32 to index
    %c0_55 = arith.constant 0 : index
    %c0_56 = arith.constant 0 : index
    %162 = vector.load %arg8[%161, %c0_55, %c0_56] : memref<4x8x32xf32, #tpu.memory_space<vmem>>, vector<1x8x32xf32>
    %163 = vector.shape_cast %162 : vector<1x8x32xf32> to vector<8x32xf32>
    %164 = vector.shape_cast %159 : vector<8x32xf32> to vector<1x8x32xf32>
    tpu.vector_store %arg8[%161, %c0_55, %c0_56], %164 {strides = array<i32>} : memref<4x8x32xf32, #tpu.memory_space<vmem>>, vector<1x8x32xf32>,
    %c2_i32 = arith.constant 2 : i32
    %165 = arith.index_cast %c2_i32 : i32 to index
    %c0_57 = arith.constant 0 : index
    %c0_58 = arith.constant 0 : index
    %166 = vector.load %arg1[%165, %c0_57, %c0_58] : memref<4x8x96xf32, #tpu.memory_space<vmem>>, vector<1x8x96xf32>
    %167 = vector.shape_cast %166 : vector<1x8x96xf32> to vector<8x96xf32>
    %c0_59 = arith.constant 0 : index
    %c0_60 = arith.constant 0 : index
    %168 = vector.load %arg9[%c0_59, %c0_60] : memref<8x32xf32, #tpu.memory_space<vmem>>, vector<8x32xf32>
    %169 = arith.truncf %168 : vector<8x32xf32> to vector<8x32xbf16>
    %cst_61 = arith.constant dense<0.000000e+00> : vector<8x96xf32>
    %170 = tpu.matmul %169, %3, %cst_61 {dimension_numbers = #tpu.dot_dimension_numbers<[1], [0], [0], [1], [0, 0, 1, 1], [], []>} : vector<8x32xbf16>, vector<32x96xbf16>, vector<8x96xf32> -> vector<8x96xf32>
    %171 = vector.extract_strided_slice %167 {offsets = [0, 0], sizes = [8, 32], strides = [1, 1]} : vector<8x96xf32> to vector<8x32xf32>
    %172 = vector.extract_strided_slice %170 {offsets = [0, 0], sizes = [8, 32], strides = [1, 1]} : vector<8x96xf32> to vector<8x32xf32>
    %173 = arith.addf %171, %172 : vector<8x32xf32>
    %174 = arith.negf %173 : vector<8x32xf32>
    %175 = math.exp %174 : vector<8x32xf32>
    %cst_62 = arith.constant 1.000000e+00 : f32
    %176 = vector.broadcast %cst_62 : f32 to vector<8x32xf32>
    %177 = arith.addf %176, %175 : vector<8x32xf32>
    %178 = arith.divf %176, %177 : vector<8x32xf32>
    %179 = vector.extract_strided_slice %167 {offsets = [0, 32], sizes = [8, 32], strides = [1, 1]} : vector<8x96xf32> to vector<8x32xf32>
    %180 = vector.extract_strided_slice %170 {offsets = [0, 32], sizes = [8, 32], strides = [1, 1]} : vector<8x96xf32> to vector<8x32xf32>
    %181 = arith.addf %179, %180 : vector<8x32xf32>
    %182 = arith.negf %181 : vector<8x32xf32>
    %183 = math.exp %182 : vector<8x32xf32>
    %cst_63 = arith.constant 1.000000e+00 : f32
    %184 = vector.broadcast %cst_63 : f32 to vector<8x32xf32>
    %185 = arith.addf %184, %183 : vector<8x32xf32>
    %186 = arith.divf %184, %185 : vector<8x32xf32>
    %187 = vector.extract_strided_slice %167 {offsets = [0, 64], sizes = [8, 32], strides = [1, 1]} : vector<8x96xf32> to vector<8x32xf32>
    %188 = vector.extract_strided_slice %170 {offsets = [0, 64], sizes = [8, 32], strides = [1, 1]} : vector<8x96xf32> to vector<8x32xf32>
    %189 = arith.addf %188, %7 : vector<8x32xf32>
    %190 = arith.mulf %178, %189 : vector<8x32xf32>
    %191 = arith.addf %187, %190 : vector<8x32xf32>
    %192 = math.tanh %191 : vector<8x32xf32>
    %cst_64 = arith.constant 1.000000e+00 : f32
    %193 = vector.broadcast %cst_64 : f32 to vector<8x32xf32>
    %194 = arith.subf %193, %186 : vector<8x32xf32>
    %195 = arith.mulf %194, %192 : vector<8x32xf32>
    %196 = arith.mulf %186, %168 : vector<8x32xf32>
    %197 = arith.addf %195, %196 : vector<8x32xf32>
    %c0_65 = arith.constant 0 : index
    %c0_66 = arith.constant 0 : index
    %198 = vector.load %arg9[%c0_65, %c0_66] : memref<8x32xf32, #tpu.memory_space<vmem>>, vector<8x32xf32>
    tpu.vector_store %arg9[%c0_65, %c0_66], %197 {strides = array<i32>} : memref<8x32xf32, #tpu.memory_space<vmem>>, vector<8x32xf32>,
    %199 = arith.index_cast %c2_i32 : i32 to index
    %c0_67 = arith.constant 0 : index
    %c0_68 = arith.constant 0 : index
    %200 = vector.load %arg7[%199, %c0_67, %c0_68] : memref<4x8x32xf32, #tpu.memory_space<vmem>>, vector<1x8x32xf32>
    %201 = vector.shape_cast %200 : vector<1x8x32xf32> to vector<8x32xf32>
    %202 = vector.shape_cast %197 : vector<8x32xf32> to vector<1x8x32xf32>
    tpu.vector_store %arg7[%199, %c0_67, %c0_68], %202 {strides = array<i32>} : memref<4x8x32xf32, #tpu.memory_space<vmem>>, vector<1x8x32xf32>,
    %c3_i32_69 = arith.constant 3 : i32
    %203 = arith.subi %c3_i32_69, %c2_i32 : i32
    %204 = arith.index_cast %203 : i32 to index
    %c0_70 = arith.constant 0 : index
    %c0_71 = arith.constant 0 : index
    %205 = vector.load %arg2[%204, %c0_70, %c0_71] : memref<4x8x96xf32, #tpu.memory_space<vmem>>, vector<1x8x96xf32>
    %206 = vector.shape_cast %205 : vector<1x8x96xf32> to vector<8x96xf32>
    %c0_72 = arith.constant 0 : index
    %c0_73 = arith.constant 0 : index
    %207 = vector.load %arg10[%c0_72, %c0_73] : memref<8x32xf32, #tpu.memory_space<vmem>>, vector<8x32xf32>
    %208 = arith.truncf %207 : vector<8x32xf32> to vector<8x32xbf16>
    %cst_74 = arith.constant dense<0.000000e+00> : vector<8x96xf32>
    %209 = tpu.matmul %208, %4, %cst_74 {dimension_numbers = #tpu.dot_dimension_numbers<[1], [0], [0], [1], [0, 0, 1, 1], [], []>} : vector<8x32xbf16>, vector<32x96xbf16>, vector<8x96xf32> -> vector<8x96xf32>
    %210 = vector.extract_strided_slice %206 {offsets = [0, 0], sizes = [8, 32], strides = [1, 1]} : vector<8x96xf32> to vector<8x32xf32>
    %211 = vector.extract_strided_slice %209 {offsets = [0, 0], sizes = [8, 32], strides = [1, 1]} : vector<8x96xf32> to vector<8x32xf32>
    %212 = arith.addf %210, %211 : vector<8x32xf32>
    %213 = arith.negf %212 : vector<8x32xf32>
    %214 = math.exp %213 : vector<8x32xf32>
    %cst_75 = arith.constant 1.000000e+00 : f32
    %215 = vector.broadcast %cst_75 : f32 to vector<8x32xf32>
    %216 = arith.addf %215, %214 : vector<8x32xf32>
    %217 = arith.divf %215, %216 : vector<8x32xf32>
    %218 = vector.extract_strided_slice %206 {offsets = [0, 32], sizes = [8, 32], strides = [1, 1]} : vector<8x96xf32> to vector<8x32xf32>
    %219 = vector.extract_strided_slice %209 {offsets = [0, 32], sizes = [8, 32], strides = [1, 1]} : vector<8x96xf32> to vector<8x32xf32>
    %220 = arith.addf %218, %219 : vector<8x32xf32>
    %221 = arith.negf %220 : vector<8x32xf32>
    %222 = math.exp %221 : vector<8x32xf32>
    %cst_76 = arith.constant 1.000000e+00 : f32
    %223 = vector.broadcast %cst_76 : f32 to vector<8x32xf32>
    %224 = arith.addf %223, %222 : vector<8x32xf32>
    %225 = arith.divf %223, %224 : vector<8x32xf32>
    %226 = vector.extract_strided_slice %206 {offsets = [0, 64], sizes = [8, 32], strides = [1, 1]} : vector<8x96xf32> to vector<8x32xf32>
    %227 = vector.extract_strided_slice %209 {offsets = [0, 64], sizes = [8, 32], strides = [1, 1]} : vector<8x96xf32> to vector<8x32xf32>
    %228 = arith.addf %227, %10 : vector<8x32xf32>
    %229 = arith.mulf %217, %228 : vector<8x32xf32>
    %230 = arith.addf %226, %229 : vector<8x32xf32>
    %231 = math.tanh %230 : vector<8x32xf32>
    %cst_77 = arith.constant 1.000000e+00 : f32
    %232 = vector.broadcast %cst_77 : f32 to vector<8x32xf32>
    %233 = arith.subf %232, %225 : vector<8x32xf32>
    %234 = arith.mulf %233, %231 : vector<8x32xf32>
    %235 = arith.mulf %225, %207 : vector<8x32xf32>
    %236 = arith.addf %234, %235 : vector<8x32xf32>
    %c0_78 = arith.constant 0 : index
    %c0_79 = arith.constant 0 : index
    %237 = vector.load %arg10[%c0_78, %c0_79] : memref<8x32xf32, #tpu.memory_space<vmem>>, vector<8x32xf32>
    tpu.vector_store %arg10[%c0_78, %c0_79], %236 {strides = array<i32>} : memref<8x32xf32, #tpu.memory_space<vmem>>, vector<8x32xf32>,
    %238 = arith.index_cast %203 : i32 to index
    %c0_80 = arith.constant 0 : index
    %c0_81 = arith.constant 0 : index
    %239 = vector.load %arg8[%238, %c0_80, %c0_81] : memref<4x8x32xf32, #tpu.memory_space<vmem>>, vector<1x8x32xf32>
    %240 = vector.shape_cast %239 : vector<1x8x32xf32> to vector<8x32xf32>
    %241 = vector.shape_cast %236 : vector<8x32xf32> to vector<1x8x32xf32>
    tpu.vector_store %arg8[%238, %c0_80, %c0_81], %241 {strides = array<i32>} : memref<4x8x32xf32, #tpu.memory_space<vmem>>, vector<1x8x32xf32>,
    %c3_i32_82 = arith.constant 3 : i32
    %242 = arith.index_cast %c3_i32_82 : i32 to index
    %c0_83 = arith.constant 0 : index
    %c0_84 = arith.constant 0 : index
    %243 = vector.load %arg1[%242, %c0_83, %c0_84] : memref<4x8x96xf32, #tpu.memory_space<vmem>>, vector<1x8x96xf32>
    %244 = vector.shape_cast %243 : vector<1x8x96xf32> to vector<8x96xf32>
    %c0_85 = arith.constant 0 : index
    %c0_86 = arith.constant 0 : index
    %245 = vector.load %arg9[%c0_85, %c0_86] : memref<8x32xf32, #tpu.memory_space<vmem>>, vector<8x32xf32>
    %246 = arith.truncf %245 : vector<8x32xf32> to vector<8x32xbf16>
    %cst_87 = arith.constant dense<0.000000e+00> : vector<8x96xf32>
    %247 = tpu.matmul %246, %3, %cst_87 {dimension_numbers = #tpu.dot_dimension_numbers<[1], [0], [0], [1], [0, 0, 1, 1], [], []>} : vector<8x32xbf16>, vector<32x96xbf16>, vector<8x96xf32> -> vector<8x96xf32>
    %248 = vector.extract_strided_slice %244 {offsets = [0, 0], sizes = [8, 32], strides = [1, 1]} : vector<8x96xf32> to vector<8x32xf32>
    %249 = vector.extract_strided_slice %247 {offsets = [0, 0], sizes = [8, 32], strides = [1, 1]} : vector<8x96xf32> to vector<8x32xf32>
    %250 = arith.addf %248, %249 : vector<8x32xf32>
    %251 = arith.negf %250 : vector<8x32xf32>
    %252 = math.exp %251 : vector<8x32xf32>
    %cst_88 = arith.constant 1.000000e+00 : f32
    %253 = vector.broadcast %cst_88 : f32 to vector<8x32xf32>
    %254 = arith.addf %253, %252 : vector<8x32xf32>
    %255 = arith.divf %253, %254 : vector<8x32xf32>
    %256 = vector.extract_strided_slice %244 {offsets = [0, 32], sizes = [8, 32], strides = [1, 1]} : vector<8x96xf32> to vector<8x32xf32>
    %257 = vector.extract_strided_slice %247 {offsets = [0, 32], sizes = [8, 32], strides = [1, 1]} : vector<8x96xf32> to vector<8x32xf32>
    %258 = arith.addf %256, %257 : vector<8x32xf32>
    %259 = arith.negf %258 : vector<8x32xf32>
    %260 = math.exp %259 : vector<8x32xf32>
    %cst_89 = arith.constant 1.000000e+00 : f32
    %261 = vector.broadcast %cst_89 : f32 to vector<8x32xf32>
    %262 = arith.addf %261, %260 : vector<8x32xf32>
    %263 = arith.divf %261, %262 : vector<8x32xf32>
    %264 = vector.extract_strided_slice %244 {offsets = [0, 64], sizes = [8, 32], strides = [1, 1]} : vector<8x96xf32> to vector<8x32xf32>
    %265 = vector.extract_strided_slice %247 {offsets = [0, 64], sizes = [8, 32], strides = [1, 1]} : vector<8x96xf32> to vector<8x32xf32>
    %266 = arith.addf %265, %7 : vector<8x32xf32>
    %267 = arith.mulf %255, %266 : vector<8x32xf32>
    %268 = arith.addf %264, %267 : vector<8x32xf32>
    %269 = math.tanh %268 : vector<8x32xf32>
    %cst_90 = arith.constant 1.000000e+00 : f32
    %270 = vector.broadcast %cst_90 : f32 to vector<8x32xf32>
    %271 = arith.subf %270, %263 : vector<8x32xf32>
    %272 = arith.mulf %271, %269 : vector<8x32xf32>
    %273 = arith.mulf %263, %245 : vector<8x32xf32>
    %274 = arith.addf %272, %273 : vector<8x32xf32>
    %c0_91 = arith.constant 0 : index
    %c0_92 = arith.constant 0 : index
    %275 = vector.load %arg9[%c0_91, %c0_92] : memref<8x32xf32, #tpu.memory_space<vmem>>, vector<8x32xf32>
    tpu.vector_store %arg9[%c0_91, %c0_92], %274 {strides = array<i32>} : memref<8x32xf32, #tpu.memory_space<vmem>>, vector<8x32xf32>,
    %276 = arith.index_cast %c3_i32_82 : i32 to index
    %c0_93 = arith.constant 0 : index
    %c0_94 = arith.constant 0 : index
    %277 = vector.load %arg7[%276, %c0_93, %c0_94] : memref<4x8x32xf32, #tpu.memory_space<vmem>>, vector<1x8x32xf32>
    %278 = vector.shape_cast %277 : vector<1x8x32xf32> to vector<8x32xf32>
    %279 = vector.shape_cast %274 : vector<8x32xf32> to vector<1x8x32xf32>
    tpu.vector_store %arg7[%276, %c0_93, %c0_94], %279 {strides = array<i32>} : memref<4x8x32xf32, #tpu.memory_space<vmem>>, vector<1x8x32xf32>,
    %c3_i32_95 = arith.constant 3 : i32
    %280 = arith.subi %c3_i32_95, %c3_i32_82 : i32
    %281 = arith.index_cast %280 : i32 to index
    %c0_96 = arith.constant 0 : index
    %c0_97 = arith.constant 0 : index
    %282 = vector.load %arg2[%281, %c0_96, %c0_97] : memref<4x8x96xf32, #tpu.memory_space<vmem>>, vector<1x8x96xf32>
    %283 = vector.shape_cast %282 : vector<1x8x96xf32> to vector<8x96xf32>
    %c0_98 = arith.constant 0 : index
    %c0_99 = arith.constant 0 : index
    %284 = vector.load %arg10[%c0_98, %c0_99] : memref<8x32xf32, #tpu.memory_space<vmem>>, vector<8x32xf32>
    %285 = arith.truncf %284 : vector<8x32xf32> to vector<8x32xbf16>
    %cst_100 = arith.constant dense<0.000000e+00> : vector<8x96xf32>
    %286 = tpu.matmul %285, %4, %cst_100 {dimension_numbers = #tpu.dot_dimension_numbers<[1], [0], [0], [1], [0, 0, 1, 1], [], []>} : vector<8x32xbf16>, vector<32x96xbf16>, vector<8x96xf32> -> vector<8x96xf32>
    %287 = vector.extract_strided_slice %283 {offsets = [0, 0], sizes = [8, 32], strides = [1, 1]} : vector<8x96xf32> to vector<8x32xf32>
    %288 = vector.extract_strided_slice %286 {offsets = [0, 0], sizes = [8, 32], strides = [1, 1]} : vector<8x96xf32> to vector<8x32xf32>
    %289 = arith.addf %287, %288 : vector<8x32xf32>
    %290 = arith.negf %289 : vector<8x32xf32>
    %291 = math.exp %290 : vector<8x32xf32>
    %cst_101 = arith.constant 1.000000e+00 : f32
    %292 = vector.broadcast %cst_101 : f32 to vector<8x32xf32>
    %293 = arith.addf %292, %291 : vector<8x32xf32>
    %294 = arith.divf %292, %293 : vector<8x32xf32>
    %295 = vector.extract_strided_slice %283 {offsets = [0, 32], sizes = [8, 32], strides = [1, 1]} : vector<8x96xf32> to vector<8x32xf32>
    %296 = vector.extract_strided_slice %286 {offsets = [0, 32], sizes = [8, 32], strides = [1, 1]} : vector<8x96xf32> to vector<8x32xf32>
    %297 = arith.addf %295, %296 : vector<8x32xf32>
    %298 = arith.negf %297 : vector<8x32xf32>
    %299 = math.exp %298 : vector<8x32xf32>
    %cst_102 = arith.constant 1.000000e+00 : f32
    %300 = vector.broadcast %cst_102 : f32 to vector<8x32xf32>
    %301 = arith.addf %300, %299 : vector<8x32xf32>
    %302 = arith.divf %300, %301 : vector<8x32xf32>
    %303 = vector.extract_strided_slice %283 {offsets = [0, 64], sizes = [8, 32], strides = [1, 1]} : vector<8x96xf32> to vector<8x32xf32>
    %304 = vector.extract_strided_slice %286 {offsets = [0, 64], sizes = [8, 32], strides = [1, 1]} : vector<8x96xf32> to vector<8x32xf32>
    %305 = arith.addf %304, %10 : vector<8x32xf32>
    %306 = arith.mulf %294, %305 : vector<8x32xf32>
    %307 = arith.addf %303, %306 : vector<8x32xf32>
    %308 = math.tanh %307 : vector<8x32xf32>
    %cst_103 = arith.constant 1.000000e+00 : f32
    %309 = vector.broadcast %cst_103 : f32 to vector<8x32xf32>
    %310 = arith.subf %309, %302 : vector<8x32xf32>
    %311 = arith.mulf %310, %308 : vector<8x32xf32>
    %312 = arith.mulf %302, %284 : vector<8x32xf32>
    %313 = arith.addf %311, %312 : vector<8x32xf32>
    %c0_104 = arith.constant 0 : index
    %c0_105 = arith.constant 0 : index
    %314 = vector.load %arg10[%c0_104, %c0_105] : memref<8x32xf32, #tpu.memory_space<vmem>>, vector<8x32xf32>
    tpu.vector_store %arg10[%c0_104, %c0_105], %313 {strides = array<i32>} : memref<8x32xf32, #tpu.memory_space<vmem>>, vector<8x32xf32>,
    %315 = arith.index_cast %280 : i32 to index
    %c0_106 = arith.constant 0 : index
    %c0_107 = arith.constant 0 : index
    %316 = vector.load %arg8[%315, %c0_106, %c0_107] : memref<4x8x32xf32, #tpu.memory_space<vmem>>, vector<1x8x32xf32>
    %317 = vector.shape_cast %316 : vector<1x8x32xf32> to vector<8x32xf32>
    %318 = vector.shape_cast %313 : vector<8x32xf32> to vector<1x8x32xf32>
    tpu.vector_store %arg8[%315, %c0_106, %c0_107], %318 {strides = array<i32>} : memref<4x8x32xf32, #tpu.memory_space<vmem>>, vector<1x8x32xf32>,
    %c4_i32 = arith.constant 4 : i32
    return
  }
  func.func @transform_0(%arg0: i32) -> (i32, i32, i32) {
    %c0_i32 = arith.constant 0 : i32
    %c0_i32_0 = arith.constant 0 : i32
    %c0_i32_1 = arith.constant 0 : i32
    return %arg0, %c0_i32, %c0_i32_0 : i32, i32, i32
  }
  func.func @transform_1(%arg0: i32) -> (i32, i32, i32) {
    %c1_i32 = arith.constant 1 : i32
    %0 = arith.subi %c1_i32, %arg0 : i32
    %c0_i32 = arith.constant 0 : i32
    %c0_i32_0 = arith.constant 0 : i32
    %c0_i32_1 = arith.constant 0 : i32
    return %0, %c0_i32, %c0_i32_0 : i32, i32, i32
  }
  func.func @transform_2(%arg0: i32) -> (i32, i32) {
    %c0_i32 = arith.constant 0 : i32
    %c0_i32_0 = arith.constant 0 : i32
    %c0_i32_1 = arith.constant 0 : i32
    return %c0_i32, %c0_i32_0 : i32, i32
  }
  func.func @transform_3(%arg0: i32) -> (i32, i32) {
    %c0_i32 = arith.constant 0 : i32
    %c0_i32_0 = arith.constant 0 : i32
    %c0_i32_1 = arith.constant 0 : i32
    return %c0_i32, %c0_i32_0 : i32, i32
  }
  func.func @transform_4(%arg0: i32) -> (i32, i32) {
    %c0_i32 = arith.constant 0 : i32
    %c0_i32_0 = arith.constant 0 : i32
    %c0_i32_1 = arith.constant 0 : i32
    return %c0_i32, %c0_i32_0 : i32, i32
  }
  func.func @transform_5(%arg0: i32) -> (i32, i32) {
    %c0_i32 = arith.constant 0 : i32
    %c0_i32_0 = arith.constant 0 : i32
    %c0_i32_1 = arith.constant 0 : i32
    return %c0_i32, %c0_i32_0 : i32, i32
  }
  func.func @transform_6(%arg0: i32) -> (i32, i32, i32) {
    %c0_i32 = arith.constant 0 : i32
    %c0_i32_0 = arith.constant 0 : i32
    %c0_i32_1 = arith.constant 0 : i32
    return %arg0, %c0_i32, %c0_i32_0 : i32, i32, i32
  }
  func.func @transform_7(%arg0: i32) -> (i32, i32, i32) {
    %c1_i32 = arith.constant 1 : i32
    %0 = arith.subi %c1_i32, %arg0 : i32
    %c0_i32 = arith.constant 0 : i32
    %c0_i32_0 = arith.constant 0 : i32
    %c0_i32_1 = arith.constant 0 : i32
    return %0, %c0_i32, %c0_i32_0 : i32, i32, i32
  }
}

</mosaic_0001>

<bundles_post_ra>
// kernel: encoder_forward.1
= control target key start
LH: loop header
LB: loop body
LE: loop exit
PB: predicated region body
PF: predicated region fallthrough
CT: control target
= control target key end

     0   :  { %s1428_s24 = smov 0   ;;  %s1632_s0 = inlined_call_operand.vmem [shape: f32[8,8,96], index: 0, kind: input, shape index: {}]   ;;  %s1633_s1 = inlined_call_operand.vmem [shape: f32[8,8,96], index: 1, kind: input, shape index: {}]   ;;  %s1634_s2 = inlined_call_operand.vmem [shape: bf16[32,96], index: 2, kind: input, shape index: {}]   ;;  %s1635_s3 = inlined_call_operand.vmem [shape: bf16[32,96], index: 3, kind: input, shape index: {}]   ;;  %s1636_s4 = inlined_call_operand.vmem [shape: f32[1,32], index: 4, kind: input, shape index: {}]   ;;  %s1637_s5 = inlined_call_operand.vmem [shape: f32[1,32], index: 5, kind: input, shape index: {}]   ;;  %s1638_s6 = inlined_call_operand.vmem [shape: f32[8,8,32], index: 6, kind: output, shape index: {0}]   ;;  %s1639_s7 = inlined_call_operand.vmem [shape: f32[8,8,32], index: 7, kind: output, shape index: {1}]  }
   0x1 LB: > { %s1170_s25 = sadd.s32 4294967295, %s1380_s24   ;;  %p1174_p0 = scmp.ge.s32.totalorder %s1380_s24, 1  ;;  %s1380_s24 = sphi %s1428_s24, %s18_s24  }
   0x2   : > { %p258_p1 = scmp.lt.s32.totalorder %s1380_s24, 3 }
   0x4   : > { %p259_p2 = pnand %p1174_p0, %p258_p1 }
   0x5   : > { %s1175_s26 = sshll.u32 (!%p259_p2), %s1170_s25, 2  ;;  %s308_s27 = ssub.s32 (!%p259_p2), 1, %s1170_s25 }
   0x6   : > { %262 = sbr.rel (%p259_p2) target bundleno = 2840 (0xb18), region = 44  ;;  %p303_p3 = scmp.lt.s32.totalorder (!%p259_p2), %s1175_s26, 7 }
   0x7   : > { %s1177_s28 = sshll.u32 (!%p259_p2), %s308_s27, 2  ;;  %p1183_p5 = scmp.ne.s32.totalorder (!%p259_p2), %s1170_s25, 0 }
   0x8   : > { %p310_p4 = scmp.lt.s32.totalorder (!%p259_p2), %s1177_s28, 7 }
   0xd   : > { %s1641_s26 = smov (!%p303_p3, %s1175_s26), 7  ;;  %s1643_s28 = smov (!%p310_p4, %s1177_s28), 7 }
   0xe   : > { %s1176_s29 = sshll.u32 %s1641_s26, 3  ;;  %s1178_s10 = sshll.u32 %s1643_s28, 3  ;;  %vm335_vm0 = vcmask (!%p1183_p5), 261120   ;;  %v1382_v0 = vmov (!%p1183_p5), 0.0  }
   0xf   : > { %s1439_s9 = scalar_lea.vmem %s1632_s0, %s1176_s29  ;;  %s1444_s13 = scalar_lea.vmem %s1633_s1, %s1178_s10  ;;  %336 = vst.msk [vmem:[#allocation2] sm:$0xff] (!%p1183_p5), %vm335_vm0, %v1382_v0  ;;  %337 = vst.msk [vmem:[#allocation3] sm:$0xff] (!%p1183_p5), %vm335_vm0, %v1382_v0 }
  0x10   : > { %s1449_s16 = scalar_lea.vmem %s1638_s6, %s1176_s29  ;;  %s1454_s19 = scalar_lea.vmem %s1639_s7, %s1178_s10 }
  0x11   : > { %334 = sbr.rel (%p1183_p5) target bundleno = 24 (0x18), region = 48 }
  0x18 PF: > { %v1459_v1 = vld [vmem:[%s1634_s2] sm:$0xff]   ;;  %v1383_v2 = vmov 0.0   ;;  %v1472_v4 = vld [vmem:[%s1634_s2 + $0x8] sm:$0xff]   ;;  %vm1384_vm1 = vmmov 0   ;;  %s1385_s8 = smov 64   ;;  %vm373_vm2 = vcmask 261120  }
  0x19   : > { %1244 = vmatprep.subr.bf16.mxu0 %v1383_v2  ;;  %1252 = vmatprep.subr.bf16.mxu1 %v1383_v2  ;;  %v1466_v3 = vld [vmem:[%s1635_s3] sm:$0xff]   ;;  %v1481_v5 = vld [vmem:[%s1635_s3 + $0x8] sm:$0xff]   ;;  %v1190_v26 = vld [vmem:[%s1444_s13 + $0x18] sm:$0xff]  ;;  %s1386_s12 = smov 32   ;;  %s1387_s14 = smov 96  }
  0x1a   : > { %1245 = vmatpush3.bf16.msra.mxu0 %v1459_v1  ;;  %1248 = vmatprep.mubr.msk.bf16.mxu0 %vm1384_vm1, %v1383_v2  ;;  %v1484_v6 = vld [vmem:[#allocation2] sm:$0xff]  ;;  %v459_v7 = vld [vmem:[#allocation3] sm:$0xff] }
  0x1b   : > { %1253 = vmatpush3.bf16.msra.mxu1 %v1466_v3  ;;  %1246 = vmatprep.subr.bf16.mxu0 %v1383_v2  ;;  %v1184_v8 = vld [vmem:[%s1636_s4] ss:$0 sm:$0xff]  ;;  %v360_v9 = vpack.c.bf16 %v1484_v6, %v1484_v6  ;;  %v460_v10 = vpack.c.bf16 %v459_v7, %v459_v7 }
  0x1c   : > { %1254 = vmatprep.subr.bf16.mxu1 %v1383_v2  ;;  %1256 = vmatprep.mubr.msk.bf16.mxu1 %vm1384_vm1, %v1383_v2  ;;  %v1185_v11 = vld [vmem:[%s1637_s5] ss:$0 sm:$0xff] }
  0x1d   : > { %424 = vrot.lane.b32.xlu0 %v1184_v8, %s1385_s8  ;;  %v358_v24 = vld [vmem:[%s1439_s9] sm:$0xff] }
  0x1e   : > { %1247 = vmatpush3.bf16.msra.mxu0 %v1472_v4 }
  0x1f   : > { %1255 = vmatpush3.bf16.msra.mxu1 %v1481_v5  ;;  %1260 = vmatprep.subr.bf16.mxu0 %v1383_v2 }
  0x20   : > { %1268 = vmatprep.subr.bf16.mxu1 %v1383_v2 }
  0x21   : > { %1249 = vmatmul.mubr.msk.bf16.vlgmr.msra.gmra.mrb[0].mxu0 %vm373_vm2, %v360_v9  ;;  %523 = vrot.lane.b32.xlu0 %v1185_v11, %s1385_s8 }
  0x22   : > { %1257 = vmatmul.mubr.msk.bf16.vlgmr.msra.gmra.mrb[0].mxu1 %vm373_vm2, %v460_v10  ;;  %1261 = vmatpush3.bf16.msra.mxu0 %v1459_v1 }
  0x23   : > { %1262 = vmatprep.subr.bf16.mxu0 %v1383_v2  ;;  %1269 = vmatpush3.bf16.msra.mxu1 %v1466_v3 }
  0x24   : > { %1264 = vmatprep.mubr.msk.bf16.mxu0 %vm1384_vm1, %v1383_v2  ;;  %1270 = vmatprep.subr.bf16.mxu1 %v1383_v2 }
  0x25   : > { %1272 = vmatprep.mubr.msk.bf16.mxu1 %vm1384_vm1, %v1383_v2 }
  0x26   : > { %1263 = vmatpush3.bf16.msra.mxu0 %v1472_v4 }
  0x27   : > { %1271 = vmatpush3.bf16.msra.mxu1 %v1481_v5  ;;  %1276 = vmatprep.subr.bf16.mxu0 %v1383_v2 }
  0x28   : > { %1284 = vmatprep.subr.bf16.mxu1 %v1383_v2 }
  0x8f   : > { %v1516_v12 = vpop.permute.xlu0 %424 }
  0x93   : > { %v1518_v14 = vpop.permute.xlu0 %523 }
  0xf4   : > { %v411_v13 = vpop.f32.mrb[0].mxu0 }
  0xf5   : > { %v1250_v15 = vpop.f32.mrb[1].mxu0  ;;  %v510_v16 = vpop.f32.mrb[0].mxu1  ;;  %v427_v17 = vadd.f32 %v1516_v12, %v411_v13  ;;  %v417_v25 = vadd.f32 %v411_v13, %v358_v24 }
  0xf6   : > { %v414_v18 = vpop.f32.mrb[2].mxu0  ;;  %v1258_v19 = vpop.f32.mrb[1].mxu1  ;;  %v526_v22 = vadd.f32 %v1518_v14, %v510_v16  ;;  %v516_v28 = vadd.f32 %v1190_v26, %v510_v16 }
  0xf7   : > { %v513_v20 = vpop.f32.mrb[2].mxu1  ;;  %429 = vrot.lane.b32.xlu1 %v427_v17, %s1385_s8  ;;  %v1251_v21 = vpop.f32.mrb[3].mxu0  ;;  %v1189_v27 = vmul.f32 -1.442695, %v417_v25  ;;  %v1196_v17 = vld [vmem:[%s1439_s9 + $0x8] sm:$0xff]  ;;  %v1200_v19 = vld [vmem:[%s1444_s13 + $0x10] sm:$0xff] }
  0xf8   : > { %v1259_v23 = vpop.f32.mrb[3].mxu1  ;;  %v1194_v29 = vmul.f32 -1.442695, %v516_v28 }
  0xf9   : > { %1326 = vpow2.f32 %v1189_v27 }
  0xfa   : > { %1328 = vpow2.f32 %v1194_v29 }
  0xfb   : > { %528 = vrot.lane.b32.xlu1 %v526_v22, %s1385_s8 }
 0x103   : > { %v1327_v30 = vpop.eup %1326 }
 0x104   : > { %v421_v31 = vadd.f32 1.0, %v1327_v30  ;;  %v1329_v32 = vpop.eup %1328 }
 0x105   : > { %v520_v33 = vadd.f32 1.0, %v1329_v32 }
 0x106   : > { %1330 = vrcp.f32 %v421_v31 }
 0x107   : > { %1332 = vrcp.f32 %v520_v33 }
 0x110   : > { %v1331_v34 = vpop.eup %1330 }
 0x111   : > { %v1333_v37 = vpop.eup %1332  ;;  %v439_v47 = vsub.f32 1.0, %v1331_v34 }
 0x112   : > { %v538_v53 = vsub.f32 1.0, %v1333_v37 }
 0x169   : > { %v430_v35 = vpop.permute.xlu1 %429 }
 0x16a   : > { %v432_v36 = vmul.f32 %v1331_v34, %v430_v35 }
 0x16c   : > { %434 = vrot.lane.b32.xlu0 %v432_v36, %s1385_s8 }
 0x16d   : > { %v529_v38 = vpop.permute.xlu1 %528 }
 0x16e   : > { %v531_v39 = vmul.f32 %v1333_v37, %v529_v38 }
 0x170   : > { %533 = vrot.lane.b32.xlu1 %v531_v39, %s1385_s8 }
 0x174   : > { %446 = vrot.lane.b32.xlu1 %v1484_v6, %s1386_s12 }
 0x178   : > { %545 = vrot.lane.b32.xlu1 %v459_v7, %s1386_s12 }
 0x1de   : > { %v435_v40 = vpop.permute.xlu0 %434 }
 0x1df   : > { %v437_v41 = vadd.f32 %v435_v40, %v358_v24 }
 0x1e1   : > { %1334 = vtanh.f32 %v437_v41 }
 0x1e2   : > { %v534_v42 = vpop.permute.xlu1 %533 }
 0x1e3   : > { %v536_v43 = vadd.f32 %v1190_v26, %v534_v42 }
 0x1e5   : > { %1336 = vtanh.f32 %v536_v43 }
 0x1e6   : > { %v447_v46 = vpop.permute.xlu1 %446 }
 0x1e7   : > { %v449_v49 = vmul.f32 %v1331_v34, %v447_v46 }
 0x1ea   : > { %v546_v51 = vpop.permute.xlu1 %545 }
 0x1eb   : > { %v1335_v44 = vpop.eup %1334  ;;  %v548_v55 = vmul.f32 %v1333_v37, %v546_v51 }
 0x1ec   : > { %441 = vrot.lane.b32.xlu0 %v1335_v44, %s1387_s14 }
 0x1ef   : > { %v1337_v45 = vpop.eup %1336 }
 0x1f0   : > { %540 = vrot.lane.b32.xlu0 %v1337_v45, %s1387_s14 }
 0x25e   : > { %v442_v48 = vpop.permute.xlu0 %441 }
 0x25f   : > { %v444_v50 = vmul.f32 %v442_v48, %v439_v47 }
 0x261   : > { %v450_v52 = vadd.f32 %v449_v49, %v444_v50 }
 0x262   : > { %v541_v54 = vpop.permute.xlu0 %540 }
 0x263   : > { %v543_v56 = vmul.f32 %v541_v54, %v538_v53  ;;  %452 = vrot.lane.b32.xlu0 %v450_v52, %s1387_s14 }
 0x265   : > { %v549_v57 = vadd.f32 %v548_v55, %v543_v56 }
 0x267   : > { %551 = vrot.lane.b32.xlu1 %v549_v57, %s1387_s14 }
 0x2d5   : > { %v453_v58 = vpop.permute.xlu0 %452 }
 0x2d6   : > { %455 = vst.msk [vmem:[#allocation2] sm:$0xff] %vm373_vm2, %v453_v58  ;;  %456 = vst.msk [vmem:[%s1449_s16] sm:$0xff] %vm373_vm2, %v453_v58 }
 0x2d9   : > { %v552_v59 = vpop.permute.xlu1 %551 }
 0x2da   : > { %554 = vst.msk [vmem:[#allocation3] sm:$0xff] %vm373_vm2, %v552_v59  ;;  %1195 = vst.msk [vmem:[%s1454_s19 + $0x18] sm:$0xff] %vm373_vm2, %v552_v59 }
 0x2dd   : > { %v559_v60 = vld [vmem:[#allocation2] sm:$0xff] }
 0x2de   : > { %v560_v61 = vpack.c.bf16 %v559_v60, %v559_v60 }
 0x2e0   : > { %1265 = vmatmul.mubr.msk.bf16.vlgmr.msra.gmra.mrb[4].mxu0 %vm373_vm2, %v560_v61 }
 0x2e1   : > { %v644_v62 = vld [vmem:[#allocation3] sm:$0xff]  ;;  %1277 = vmatpush3.bf16.msra.mxu0 %v1459_v1  ;;  %1280 = vmatprep.mubr.msk.bf16.mxu0 %vm1384_vm1, %v1383_v2 }
 0x2e2   : > { %v645_v63 = vpack.c.bf16 %v644_v62, %v644_v62  ;;  %1278 = vmatprep.subr.bf16.mxu0 %v1383_v2 }
 0x2e4   : > { %1273 = vmatmul.mubr.msk.bf16.vlgmr.msra.gmra.mrb[4].mxu1 %vm373_vm2, %v645_v63 }
 0x2e5   : > { %1279 = vmatpush3.bf16.msra.mxu0 %v1472_v4  ;;  %1285 = vmatpush3.bf16.msra.mxu1 %v1466_v3 }
 0x2e6   : > { %1286 = vmatprep.subr.bf16.mxu1 %v1383_v2  ;;  %1288 = vmatprep.mubr.msk.bf16.mxu1 %vm1384_vm1, %v1383_v2 }
 0x2e7   : > { %1292 = vmatprep.subr.bf16.mxu0 %v1383_v2 }
 0x2e9   : > { %1287 = vmatpush3.bf16.msra.mxu1 %v1481_v5 }
 0x2ea   : > { %1300 = vmatprep.subr.bf16.mxu1 %v1383_v2 }
 0x3b3   : > { %v598_v0 = vpop.f32.mrb[4].mxu0 }
 0x3b4   : > { %v611_v6 = vadd.f32 %v598_v0, %v1516_v12  ;;  %v1266_v7 = vpop.f32.mrb[5].mxu0  ;;  %v604_v18 = vadd.f32 %v1196_v17, %v598_v0 }
 0x3b5   : > { %v601_v8 = vpop.f32.mrb[6].mxu0 }
 0x3b6   : > { %613 = vrot.lane.b32.xlu0 %v611_v6, %s1385_s8  ;;  %v1267_v9 = vpop.f32.mrb[7].mxu0  ;;  %v1198_v20 = vmul.f32 -1.442695, %v604_v18  ;;  %v1208_v6 = vld [vmem:[%s1444_s13 + $0x8] sm:$0xff] }
 0x3b7   : > { %v683_v10 = vpop.f32.mrb[4].mxu1 }
 0x3b8   : > { %v696_v11 = vadd.f32 %v683_v10, %v1518_v14  ;;  %v1274_v13 = vpop.f32.mrb[5].mxu1  ;;  %v689_v21 = vadd.f32 %v1200_v19, %v683_v10  ;;  %1338 = vpow2.f32 %v1198_v20 }
 0x3b9   : > { %v686_v15 = vpop.f32.mrb[6].mxu1 }
 0x3ba   : > { %698 = vrot.lane.b32.xlu1 %v696_v11, %s1385_s8  ;;  %v1275_v16 = vpop.f32.mrb[7].mxu1  ;;  %v1202_v22 = vmul.f32 -1.442695, %v689_v21 }
 0x3bc   : > { %1340 = vpow2.f32 %v1202_v22 }
 0x3c2   : > { %v1339_v23 = vpop.eup %1338 }
 0x3c3   : > { %v608_v24 = vadd.f32 1.0, %v1339_v23 }
 0x3c5   : > { %1342 = vrcp.f32 %v608_v24 }
 0x3c6   : > { %v1341_v25 = vpop.eup %1340 }
 0x3c7   : > { %v693_v26 = vadd.f32 1.0, %v1341_v25 }
 0x3c9   : > { %1344 = vrcp.f32 %v693_v26 }
 0x3cf   : > { %v1343_v27 = vpop.eup %1342 }
 0x3d0   : > { %v623_v40 = vsub.f32 1.0, %v1343_v27 }
 0x3d3   : > { %v1345_v30 = vpop.eup %1344 }
 0x3d4   : > { %v708_v46 = vsub.f32 1.0, %v1345_v30 }
 0x428   : > { %v614_v28 = vpop.permute.xlu0 %613 }
 0x429   : > { %v616_v29 = vmul.f32 %v1343_v27, %v614_v28 }
 0x42b   : > { %618 = vrot.lane.b32.xlu0 %v616_v29, %s1385_s8 }
 0x42c   : > { %v699_v31 = vpop.permute.xlu1 %698 }
 0x42d   : > { %v701_v32 = vmul.f32 %v1345_v30, %v699_v31 }
 0x42f   : > { %703 = vrot.lane.b32.xlu1 %v701_v32, %s1385_s8 }
 0x433   : > { %630 = vrot.lane.b32.xlu1 %v559_v60, %s1386_s12 }
 0x437   : > { %715 = vrot.lane.b32.xlu1 %v644_v62, %s1386_s12 }
 0x49d   : > { %v619_v33 = vpop.permute.xlu0 %618 }
 0x49e   : > { %v621_v34 = vadd.f32 %v1196_v17, %v619_v33 }
 0x4a0   : > { %1346 = vtanh.f32 %v621_v34 }
 0x4a1   : > { %v704_v35 = vpop.permute.xlu1 %703 }
 0x4a2   : > { %v706_v36 = vadd.f32 %v1200_v19, %v704_v35 }
 0x4a4   : > { %1348 = vtanh.f32 %v706_v36 }
 0x4a5   : > { %v631_v39 = vpop.permute.xlu1 %630 }
 0x4a6   : > { %v633_v42 = vmul.f32 %v1343_v27, %v631_v39 }
 0x4a9   : > { %v716_v44 = vpop.permute.xlu1 %715 }
 0x4aa   : > { %v1347_v37 = vpop.eup %1346  ;;  %v718_v48 = vmul.f32 %v1345_v30, %v716_v44 }
 0x4ab   : > { %625 = vrot.lane.b32.xlu0 %v1347_v37, %s1387_s14 }
 0x4ae   : > { %v1349_v38 = vpop.eup %1348 }
 0x4af   : > { %710 = vrot.lane.b32.xlu0 %v1349_v38, %s1387_s14 }
 0x51d   : > { %v626_v41 = vpop.permute.xlu0 %625 }
 0x51e   : > { %v628_v43 = vmul.f32 %v626_v41, %v623_v40 }
 0x520   : > { %v634_v45 = vadd.f32 %v633_v42, %v628_v43 }
 0x521   : > { %v711_v47 = vpop.permute.xlu0 %710 }
 0x522   : > { %v713_v49 = vmul.f32 %v711_v47, %v708_v46  ;;  %636 = vrot.lane.b32.xlu0 %v634_v45, %s1387_s14 }
 0x524   : > { %v719_v50 = vadd.f32 %v718_v48, %v713_v49 }
 0x526   : > { %721 = vrot.lane.b32.xlu1 %v719_v50, %s1387_s14 }
 0x594   : > { %v637_v51 = vpop.permute.xlu0 %636 }
 0x595   : > { %639 = vst.msk [vmem:[#allocation2] sm:$0xff] %vm373_vm2, %v637_v51  ;;  %1199 = vst.msk [vmem:[%s1449_s16 + $0x8] sm:$0xff] %vm373_vm2, %v637_v51 }
 0x598   : > { %v722_v52 = vpop.permute.xlu1 %721 }
 0x599   : > { %724 = vst.msk [vmem:[#allocation3] sm:$0xff] %vm373_vm2, %v722_v52  ;;  %1203 = vst.msk [vmem:[%s1454_s19 + $0x10] sm:$0xff] %vm373_vm2, %v722_v52 }
 0x59c   : > { %v729_v53 = vld [vmem:[#allocation2] sm:$0xff] }
 0x59d   : > { %v730_v54 = vpack.c.bf16 %v729_v53, %v729_v53 }
 0x59f   : > { %1281 = vmatmul.mubr.msk.bf16.vlgmr.msra.gmra.mrb[8].mxu0 %vm373_vm2, %v730_v54 }
 0x5a0   : > { %v814_v55 = vld [vmem:[#allocation3] sm:$0xff]  ;;  %1293 = vmatpush3.bf16.msra.mxu0 %v1459_v1  ;;  %1296 = vmatprep.mubr.msk.bf16.mxu0 %vm1384_vm1, %v1383_v2 }
 0x5a1   : > { %v815_v56 = vpack.c.bf16 %v814_v55, %v814_v55  ;;  %1294 = vmatprep.subr.bf16.mxu0 %v1383_v2 }
 0x5a3   : > { %1289 = vmatmul.mubr.msk.bf16.vlgmr.msra.gmra.mrb[8].mxu1 %vm373_vm2, %v815_v56 }
 0x5a4   : > { %1295 = vmatpush3.bf16.msra.mxu0 %v1472_v4  ;;  %1301 = vmatpush3.bf16.msra.mxu1 %v1466_v3 }
 0x5a5   : > { %1302 = vmatprep.subr.bf16.mxu1 %v1383_v2  ;;  %1304 = vmatprep.mubr.msk.bf16.mxu1 %vm1384_vm1, %v1383_v2  ;;  %v1204_v2 = vld [vmem:[%s1439_s9 + $0x10] sm:$0xff] }
 0x5a8   : > { %1303 = vmatpush3.bf16.msra.mxu1 %v1481_v5 }
 0x672   : > { %v768_v1 = vpop.f32.mrb[8].mxu0 }
 0x673   : > { %v781_v57 = vadd.f32 %v768_v1, %v1516_v12  ;;  %v1282_v58 = vpop.f32.mrb[9].mxu0  ;;  %v774_v0 = vadd.f32 %v1204_v2, %v768_v1  ;;  %v982_v1 = vld [vmem:[%s1444_s13] sm:$0xff] }
 0x674   : > { %v771_v59 = vpop.f32.mrb[10].mxu0 }
 0x675   : > { %783 = vrot.lane.b32.xlu0 %v781_v57, %s1385_s8  ;;  %v1283_v60 = vpop.f32.mrb[11].mxu0  ;;  %v1206_v5 = vmul.f32 -1.442695, %v774_v0 }
 0x676   : > { %v853_v4 = vpop.f32.mrb[8].mxu1 }
 0x677   : > { %v866_v3 = vadd.f32 %v853_v4, %v1518_v14  ;;  %v1290_v61 = vpop.f32.mrb[9].mxu1  ;;  %v859_v7 = vadd.f32 %v1208_v6, %v853_v4  ;;  %1350 = vpow2.f32 %v1206_v5 }
 0x678   : > { %v856_v62 = vpop.f32.mrb[10].mxu1 }
 0x679   : > { %868 = vrot.lane.b32.xlu1 %v866_v3, %s1385_s8  ;;  %v1291_v63 = vpop.f32.mrb[11].mxu1  ;;  %v1210_v8 = vmul.f32 -1.442695, %v859_v7 }
 0x67b   : > { %1352 = vpow2.f32 %v1210_v8 }
 0x681   : > { %v1351_v9 = vpop.eup %1350 }
 0x682   : > { %v778_v10 = vadd.f32 1.0, %v1351_v9 }
 0x684   : > { %1354 = vrcp.f32 %v778_v10 }
 0x685   : > { %v1353_v11 = vpop.eup %1352 }
 0x686   : > { %v863_v13 = vadd.f32 1.0, %v1353_v11 }
 0x688   : > { %1356 = vrcp.f32 %v863_v13 }
 0x68e   : > { %v1355_v15 = vpop.eup %1354 }
 0x68f   : > { %v793_v28 = vsub.f32 1.0, %v1355_v15 }
 0x692   : > { %v1357_v18 = vpop.eup %1356 }
 0x693   : > { %v878_v34 = vsub.f32 1.0, %v1357_v18 }
 0x6e7   : > { %v784_v16 = vpop.permute.xlu0 %783 }
 0x6e8   : > { %v786_v17 = vmul.f32 %v1355_v15, %v784_v16 }
 0x6ea   : > { %788 = vrot.lane.b32.xlu0 %v786_v17, %s1385_s8 }
 0x6eb   : > { %v869_v19 = vpop.permute.xlu1 %868 }
 0x6ec   : > { %v871_v20 = vmul.f32 %v1357_v18, %v869_v19 }
 0x6ee   : > { %873 = vrot.lane.b32.xlu1 %v871_v20, %s1385_s8 }
 0x6f2   : > { %800 = vrot.lane.b32.xlu1 %v729_v53, %s1386_s12 }
 0x6f6   : > { %885 = vrot.lane.b32.xlu1 %v814_v55, %s1386_s12  ;;  %v1212_v55 = vld [vmem:[%s1439_s9 + $0x18] sm:$0xff] }
 0x75c   : > { %v789_v21 = vpop.permute.xlu0 %788 }
 0x75d   : > { %v791_v22 = vadd.f32 %v1204_v2, %v789_v21 }
 0x75f   : > { %1358 = vtanh.f32 %v791_v22 }
 0x760   : > { %v874_v23 = vpop.permute.xlu1 %873 }
 0x761   : > { %v876_v24 = vadd.f32 %v1208_v6, %v874_v23 }
 0x763   : > { %1360 = vtanh.f32 %v876_v24 }
 0x764   : > { %v801_v27 = vpop.permute.xlu1 %800 }
 0x765   : > { %v803_v30 = vmul.f32 %v1355_v15, %v801_v27 }
 0x768   : > { %v886_v32 = vpop.permute.xlu1 %885 }
 0x769   : > { %v1359_v25 = vpop.eup %1358  ;;  %v888_v36 = vmul.f32 %v1357_v18, %v886_v32 }
 0x76a   : > { %795 = vrot.lane.b32.xlu0 %v1359_v25, %s1387_s14 }
 0x76d   : > { %v1361_v26 = vpop.eup %1360 }
 0x76e   : > { %880 = vrot.lane.b32.xlu0 %v1361_v26, %s1387_s14 }
 0x7dc   : > { %v796_v29 = vpop.permute.xlu0 %795 }
 0x7dd   : > { %v798_v31 = vmul.f32 %v796_v29, %v793_v28 }
 0x7df   : > { %v804_v33 = vadd.f32 %v803_v30, %v798_v31 }
 0x7e0   : > { %v881_v35 = vpop.permute.xlu0 %880 }
 0x7e1   : > { %v883_v37 = vmul.f32 %v881_v35, %v878_v34  ;;  %806 = vrot.lane.b32.xlu0 %v804_v33, %s1387_s14 }
 0x7e3   : > { %v889_v38 = vadd.f32 %v888_v36, %v883_v37 }
 0x7e5   : > { %891 = vrot.lane.b32.xlu1 %v889_v38, %s1387_s14 }
 0x853   : > { %v807_v39 = vpop.permute.xlu0 %806 }
 0x854   : > { %809 = vst.msk [vmem:[#allocation2] sm:$0xff] %vm373_vm2, %v807_v39  ;;  %1207 = vst.msk [vmem:[%s1449_s16 + $0x10] sm:$0xff] %vm373_vm2, %v807_v39 }
 0x857   : > { %v892_v40 = vpop.permute.xlu1 %891 }
 0x858   : > { %894 = vst.msk [vmem:[#allocation3] sm:$0xff] %vm373_vm2, %v892_v40  ;;  %1211 = vst.msk [vmem:[%s1454_s19 + $0x8] sm:$0xff] %vm373_vm2, %v892_v40 }
 0x85b   : > { %v899_v41 = vld [vmem:[#allocation2] sm:$0xff] }
 0x85c   : > { %v900_v42 = vpack.c.bf16 %v899_v41, %v899_v41 }
 0x85e   : > { %1297 = vmatmul.mubr.msk.bf16.vlgmr.msra.gmra.mrb[12].mxu0 %vm373_vm2, %v900_v42 }
 0x85f   : > { %v983_v43 = vld [vmem:[#allocation3] sm:$0xff] }
 0x860   : > { %v984_v44 = vpack.c.bf16 %v983_v43, %v983_v43 }
 0x862   : > { %1305 = vmatmul.mubr.msk.bf16.vlgmr.msra.gmra.mrb[12].mxu1 %vm373_vm2, %v984_v44 }
 0x931   : > { %v938_v45 = vpop.f32.mrb[12].mxu0 }
 0x932   : > { %v951_v46 = vadd.f32 %v938_v45, %v1516_v12  ;;  %v1298_v47 = vpop.f32.mrb[13].mxu0  ;;  %v944_v56 = vadd.f32 %v1212_v55, %v938_v45 }
 0x933   : > { %v941_v48 = vpop.f32.mrb[14].mxu0 }
 0x934   : > { %953 = vrot.lane.b32.xlu0 %v951_v46, %s1385_s8  ;;  %v1299_v49 = vpop.f32.mrb[15].mxu0  ;;  %v1214_v57 = vmul.f32 -1.442695, %v944_v56 }
 0x935   : > { %v1022_v50 = vpop.f32.mrb[12].mxu1 }
 0x936   : > { %v1035_v51 = vadd.f32 %v1022_v50, %v1518_v14  ;;  %v1306_v52 = vpop.f32.mrb[13].mxu1  ;;  %v1028_v58 = vadd.f32 %v1022_v50, %v982_v1  ;;  %1362 = vpow2.f32 %v1214_v57 }
 0x937   : > { %v1025_v53 = vpop.f32.mrb[14].mxu1 }
 0x938   : > { %1037 = vrot.lane.b32.xlu1 %v1035_v51, %s1385_s8  ;;  %v1307_v54 = vpop.f32.mrb[15].mxu1  ;;  %v1217_v12 = vmul.f32 -1.442695, %v1028_v58 }
 0x93a   : > { %1364 = vpow2.f32 %v1217_v12 }
 0x940   : > { %v1363_v59 = vpop.eup %1362 }
 0x941   : > { %v948_v60 = vadd.f32 1.0, %v1363_v59 }
 0x943   : > { %1366 = vrcp.f32 %v948_v60 }
 0x944   : > { %v1365_v4 = vpop.eup %1364 }
 0x945   : > { %v1032_v3 = vadd.f32 1.0, %v1365_v4 }
 0x947   : > { %1368 = vrcp.f32 %v1032_v3 }
 0x94d   : > { %v1367_v14 = vpop.eup %1366 }
 0x94e   : > { %v963_v13 = vsub.f32 1.0, %v1367_v14 }
 0x951   : > { %v1369_v63 = vpop.eup %1368 }
 0x952   : > { %v1047_v20 = vsub.f32 1.0, %v1369_v63 }
 0x9a6   : > { %v954_v61 = vpop.permute.xlu0 %953 }
 0x9a7   : > { %v956_v62 = vmul.f32 %v1367_v14, %v954_v61 }
 0x9a9   : > { %958 = vrot.lane.b32.xlu0 %v956_v62, %s1385_s8 }
 0x9aa   : > { %v1038_v2 = vpop.permute.xlu1 %1037 }
 0x9ab   : > { %v1040_v0 = vmul.f32 %v1369_v63, %v1038_v2 }
 0x9ad   : > { %1042 = vrot.lane.b32.xlu1 %v1040_v0, %s1385_s8 }
 0x9b1   : > { %970 = vrot.lane.b32.xlu1 %v899_v41, %s1386_s12 }
 0x9b5   : > { %1054 = vrot.lane.b32.xlu1 %v983_v43, %s1386_s12 }
 0xa1b   : > { %v959_v6 = vpop.permute.xlu0 %958 }
 0xa1c   : > { %v961_v5 = vadd.f32 %v1212_v55, %v959_v6 }
 0xa1e   : > { %1370 = vtanh.f32 %v961_v5 }
 0xa1f   : > { %v1043_v7 = vpop.permute.xlu1 %1042 }
 0xa20   : > { %v1045_v8 = vadd.f32 %v1043_v7, %v982_v1 }
 0xa22   : > { %1372 = vtanh.f32 %v1045_v8 }
 0xa23   : > { %v971_v11 = vpop.permute.xlu1 %970 }
 0xa24   : > { %v973_v16 = vmul.f32 %v1367_v14, %v971_v11 }
 0xa27   : > { %v1055_v18 = vpop.permute.xlu1 %1054 }
 0xa28   : > { %v1371_v9 = vpop.eup %1370  ;;  %v1057_v22 = vmul.f32 %v1369_v63, %v1055_v18 }
 0xa29   : > { %965 = vrot.lane.b32.xlu0 %v1371_v9, %s1387_s14 }
 0xa2c   : > { %v1373_v10 = vpop.eup %1372 }
 0xa2d   : > { %1049 = vrot.lane.b32.xlu0 %v1373_v10, %s1387_s14 }
 0xa9b   : > { %v966_v15 = vpop.permute.xlu0 %965 }
 0xa9c   : > { %v968_v17 = vmul.f32 %v966_v15, %v963_v13 }
 0xa9e   : > { %v974_v19 = vadd.f32 %v973_v16, %v968_v17 }
 0xa9f   : > { %v1050_v21 = vpop.permute.xlu0 %1049 }
 0xaa0   : > { %v1052_v23 = vmul.f32 %v1050_v21, %v1047_v20  ;;  %976 = vrot.lane.b32.xlu0 %v974_v19, %s1387_s14 }
 0xaa2   : > { %v1058_v24 = vadd.f32 %v1057_v22, %v1052_v23 }
 0xaa4   : > { %1060 = vrot.lane.b32.xlu1 %v1058_v24, %s1387_s14 }
 0xb12   : > { %v977_v25 = vpop.permute.xlu0 %976 }
 0xb13   : > { %979 = vst.msk [vmem:[#allocation2] sm:$0xff] %vm373_vm2, %v977_v25  ;;  %1215 = vst.msk [vmem:[%s1449_s16 + $0x18] sm:$0xff] %vm373_vm2, %v977_v25 }
 0xb16   : > { %v1061_v26 = vpop.permute.xlu1 %1060 }
 0xb17   : > { %1063 = vst.msk [vmem:[#allocation3] sm:$0xff] %vm373_vm2, %v1061_v26  ;;  %1064 = vst.msk [vmem:[%s1454_s19] sm:$0xff] %vm373_vm2, %v1061_v26 }
 0xb18 PF: > { %s18_s24 = sadd.s32 1, %s1380_s24  }
 0xb19   : > { %p15_p6 = scmp.ge.s32.totalorder %s18_s24, 4  }
 0xb1b   :  { %17 = sbr.rel (!%p15_p6) target bundleno = 1 (0x1), region = 105 }

</bundles_post_ra>
